<compile_context>
chip_gen: v5e
topology: v5e:2x2
jax: 0.10.0
libtpu: 0.0.40
codegen_flags: <defaults>
</compile_context>

<pallas_src>
import functools

import jax
import jax.numpy as jnp
from jax.experimental import pallas as pl
from jax.experimental.pallas import tpu as pltpu

EPS = 1e-5
_VMEM_LIMIT = 32 * 1024 * 1024        # safe on v5e/v6e (128 MiB) and v7x (64 MiB physical)
_TARGET_BLOCK_BYTES = 2 * 1024 * 1024  # ~2 MiB tiles: flat part of the tiling sweep
_MAX_LANE_TILE = 8192                  # bounds per-tile chunk count / unroll


def _pick_tiles(rows, hw, itemsize):
    """Row (sublane) and lane tile sizes. hw is >= 128 here.

    Lane tile: multiple of 128 (tails handled by cdiv grid + in-kernel masking).
    Row tile: multiple of 8, or the full extent when rows < 8.
    """
    ht = min((hw // 128) * 128, _MAX_LANE_TILE)
    if rows <= 8:
        rt = rows
    else:
        rt = max(8, (min(_TARGET_BLOCK_BYTES // (ht * itemsize), rows) // 8) * 8)
    return rt, ht


def _bn_stats_kernel(x_ref, acc_ref, *, ht, split_tiles, hw, needs_mask):
    # x_ref: (rt, ht). acc_ref: (1, rt, 256), resident across the hw axis:
    # lanes 0:128 accumulate sum, lanes 128:256 accumulate sum of squares.
    hi = pl.program_id(2)

    @pl.when(hi == 0)
    def _init():
        acc_ref[...] = jnp.zeros_like(acc_ref)

    rt = x_ref.shape[0]
    n_chunks = ht // 128
    base = (pl.program_id(0) * split_tiles + hi) * ht
    lane = (jax.lax.broadcasted_iota(jnp.int32, (rt, 128), 1) if needs_mask else None)

    def chunk(j):
        xj = x_ref[:, j * 128:(j + 1) * 128].astype(jnp.float32)
        if needs_mask:
            # Zero out lanes beyond the true hw extent (tail tiles and the
            # clamped duplicate tile of an odd split contribute nothing).
            xj = jnp.where(base + j * 128 + lane < hw, xj, 0.0)
        return xj

    if rt <= 64:
        # Partial sums stay in vregs across the (bounded) chunk loop; a single
        # read-modify-write of the resident accumulator block per grid step.
        s = jnp.zeros((rt, 128), jnp.float32)
        q = jnp.zeros((rt, 128), jnp.float32)
        for j in range(n_chunks):
            xj = chunk(j)
            s = s + xj
            q = q + xj * xj
        acc_ref[0, :, 0:128] = acc_ref[0, :, 0:128] + s
        acc_ref[0, :, 128:256] = acc_ref[0, :, 128:256] + q
    else:
        # Wide row tiles (small hw -> few chunks): accumulate straight into VMEM.
        for j in range(n_chunks):
            xj = chunk(j)
            acc_ref[0, :, 0:128] = acc_ref[0, :, 0:128] + xj
            acc_ref[0, :, 128:256] = acc_ref[0, :, 128:256] + xj * xj


def _bn_norm_kernel(x_ref, scale_ref, shift_ref, o_ref):
    # Affine folded into per-row scale/shift: y = x * scale + shift.
    x = x_ref[...].astype(jnp.float32)
    o_ref[...] = (x * scale_ref[...] + shift_ref[...]).astype(o_ref.dtype)


def batchnorm_pallas(x, gamma, beta, eps=EPS):
    """x: (N, C, *spatial) -- covers BatchNorm2d (NCHW) and BatchNorm3d (NCDHW).
    gamma, beta: (C,). Returns training-mode BN forward output with x's shape/dtype."""
    orig_shape = x.shape
    n, c = orig_shape[0], orig_shape[1]
    hw = 1
    for d in orig_shape[2:]:
        hw *= d
    rows = n * c

    x2 = x.reshape(rows, hw)
    hw_p = hw
    if hw < 128:
        # Tiny spatial extent: pad lanes with zeros (zero contribution to the
        # sums; the count below uses the true hw).
        hw_p = 128
        x2 = jnp.pad(x2, ((0, 0), (0, hw_p - hw)))

    rt, ht = _pick_tiles(rows, hw_p, x.dtype.itemsize)
    n_rt = pl.cdiv(rows, rt)
    n_ht = pl.cdiv(hw_p, ht)

    # Split hw tiles over a leading parallel axis so phase 1 always has a >=2-extent
    # parallel axis for v7x's two TensorCores (when there is enough work).
    splits = 2 if n_ht >= 2 else 1
    split_tiles = pl.cdiv(n_ht, splits)
    needs_mask = (splits * split_tiles * ht) != hw_p

    # ---- Phase 1: per-row partial sum / sum-of-squares, f32, lane-dense accumulator ----
    stats = pl.pallas_call(
        functools.partial(_bn_stats_kernel, ht=ht, split_tiles=split_tiles,
                          hw=hw_p, needs_mask=needs_mask),
        grid=(splits, n_rt, split_tiles),
        in_specs=[pl.BlockSpec(
            (rt, ht),
            lambda s, ri, hi: (ri, jnp.minimum(s * split_tiles + hi, n_ht - 1)))],
        out_specs=pl.BlockSpec((1, rt, 256), lambda s, ri, hi: (s, ri, 0)),
        out_shape=jax.ShapeDtypeStruct((splits, rows, 256), jnp.float32),
        compiler_params=pltpu.CompilerParams(
            dimension_semantics=("parallel", "parallel", "arbitrary"),
            vmem_limit_bytes=_VMEM_LIMIT,
        ),
    )(x2)

    # ---- Tiny epilogue in plain JAX: finish reductions, fold affine into scale/shift ----
    count = jnp.float32(n * hw)
    p = stats.reshape(splits, n, c, 2, 128)
    total = jnp.sum(p[:, :, :, 0, :], axis=(0, 1, 3))      # (C,)
    total_sq = jnp.sum(p[:, :, :, 1, :], axis=(0, 1, 3))   # (C,)
    mean = total / count
    # TODO(synk): E[x^2]-E[x]^2 in f32 loses precision when |mean| >> std
    # (PyTorch effectively uses a two-pass variance); the clamp only prevents
    # negative variance, not the cancellation itself.
    var = jnp.maximum(total_sq / count - mean * mean, 0.0)
    inv_std = jax.lax.rsqrt(var + eps)
    scale_c = gamma.astype(jnp.float32) * inv_std
    shift_c = beta.astype(jnp.float32) - mean * scale_c
    scale_r = jnp.broadcast_to(scale_c[None, :], (n, c)).reshape(rows, 1)
    shift_r = jnp.broadcast_to(shift_c[None, :], (n, c)).reshape(rows, 1)

    # ---- Phase 2: normalize; lane-dense tiles, both axes parallel ----
    out2 = pl.pallas_call(
        _bn_norm_kernel,
        grid=(n_rt, n_ht),
        in_specs=[
            pl.BlockSpec((rt, ht), lambda ri, hi: (ri, hi)),
            pl.BlockSpec((rt, 1), lambda ri, hi: (ri, 0)),   # resident per-row scale
            pl.BlockSpec((rt, 1), lambda ri, hi: (ri, 0)),   # resident per-row shift
        ],
        out_specs=pl.BlockSpec((rt, ht), lambda ri, hi: (ri, hi)),
        out_shape=jax.ShapeDtypeStruct((rows, hw_p), x.dtype),
        compiler_params=pltpu.CompilerParams(
            dimension_semantics=("parallel", "parallel"),
            vmem_limit_bytes=_VMEM_LIMIT,
        ),
    )(x2, scale_r, shift_r)

    if hw_p != hw:
        out2 = out2[:, :hw]
    return out2.reshape(orig_shape)


if __name__ == "__main__":
    key = jax.random.PRNGKey(0)
    N, C, H, W = 2, 4, 16, 16
    x = jax.random.normal(key, (N, C, H, W), dtype=jnp.float32)

    # nn.BatchNorm2d default parameter init.
    gamma = jnp.ones((C,), dtype=jnp.float32)
    beta = jnp.zeros((C,), dtype=jnp.float32)

    y = batchnorm_pallas(x, gamma, beta)
    jax.block_until_ready(y)

    # Plain-JAX reference (training-mode BN semantics).
    mean = jnp.mean(x, axis=(0, 2, 3), keepdims=True)
    var = jnp.mean((x - mean) ** 2, axis=(0, 2, 3), keepdims=True)
    y_ref = (x - mean) / jnp.sqrt(var + EPS) * gamma.reshape(1, C, 1, 1) + beta.reshape(1, C, 1, 1)
    assert jnp.allclose(y, y_ref, atol=1e-4, rtol=1e-4), float(jnp.max(jnp.abs(y - y_ref)))

    print("KERNEL_OK")
</pallas_src>

<mosaic_0001>
module attributes {stable_mosaic.version = 11 : i64} {
  func.func @_bn_stats_kernel(%arg0: i32, %arg1: i32, %arg2: i32, %arg3: memref<8x256xf32, #tpu.memory_space<vmem>>, %arg4: memref<1x8x256xf32, #tpu.memory_space<vmem>>) attributes {dimension_semantics = [#tpu.dimension_semantics<parallel>, #tpu.dimension_semantics<parallel>, #tpu.dimension_semantics<arbitrary>], iteration_bounds = array<i64: 1, 1, 1>, scalar_prefetch = 0 : i64, scratch_operands = 0 : i64, tpu.core_type = #tpu.core_type<tc>, window_params = [{transform_indices = @transform_0, window_bounds = array<i64: 8, 256>}, {transform_indices = @transform_1, window_bounds = array<i64: 1, 8, 256>}]} {
    %c0_i32 = arith.constant 0 : i32
    %0 = arith.cmpi eq, %arg2, %c0_i32 : i32
    %1 = arith.extui %0 : i1 to i32
    %c0_i32_0 = arith.constant 0 : i32
    %2 = arith.cmpi ne, %1, %c0_i32_0 : i32
    scf.if %2 {
      %cst_16 = arith.constant 0.000000e+00 : f32
      %25 = vector.broadcast %cst_16 : f32 to vector<1x8x256xf32>
      %c0_17 = arith.constant 0 : index
      %c0_18 = arith.constant 0 : index
      %c0_19 = arith.constant 0 : index
      %26 = vector.load %arg4[%c0_17, %c0_18, %c0_19] : memref<1x8x256xf32, #tpu.memory_space<vmem>>, vector<1x8x256xf32>
      tpu.vector_store %arg4[%c0_17, %c0_18, %c0_19], %25 {strides = array<i32>} : memref<1x8x256xf32, #tpu.memory_space<vmem>>, vector<1x8x256xf32>,
    } else {
    }
    %cst = arith.constant 0.000000e+00 : f32
    %3 = vector.broadcast %cst : f32 to vector<8x128xf32>
    %cst_1 = arith.constant 0.000000e+00 : f32
    %4 = vector.broadcast %cst_1 : f32 to vector<8x128xf32>
    %c0 = arith.constant 0 : index
    %c0_2 = arith.constant 0 : index
    %5 = vector.load %arg3[%c0, %c0_2] : memref<8x256xf32, #tpu.memory_space<vmem>>, vector<8x128xf32>
    %6 = arith.addf %3, %5 : vector<8x128xf32>
    %7 = arith.mulf %5, %5 : vector<8x128xf32>
    %8 = arith.addf %4, %7 : vector<8x128xf32>
    %c0_3 = arith.constant 0 : index
    %c128 = arith.constant 128 : index
    %9 = vector.load %arg3[%c0_3, %c128] : memref<8x256xf32, #tpu.memory_space<vmem>>, vector<8x128xf32>
    %10 = arith.addf %6, %9 : vector<8x128xf32>
    %11 = arith.mulf %9, %9 : vector<8x128xf32>
    %12 = arith.addf %8, %11 : vector<8x128xf32>
    %c0_4 = arith.constant 0 : index
    %c0_5 = arith.constant 0 : index
    %c0_6 = arith.constant 0 : index
    %13 = vector.load %arg4[%c0_4, %c0_5, %c0_6] : memref<1x8x256xf32, #tpu.memory_space<vmem>>, vector<1x8x128xf32>
    %14 = vector.shape_cast %13 : vector<1x8x128xf32> to vector<8x128xf32>
    %15 = arith.addf %14, %10 : vector<8x128xf32>
    %c0_7 = arith.constant 0 : index
    %c0_8 = arith.constant 0 : index
    %c0_9 = arith.constant 0 : index
    %16 = vector.load %arg4[%c0_7, %c0_8, %c0_9] : memref<1x8x256xf32, #tpu.memory_space<vmem>>, vector<1x8x128xf32>
    %17 = vector.shape_cast %16 : vector<1x8x128xf32> to vector<8x128xf32>
    %18 = vector.shape_cast %15 : vector<8x128xf32> to vector<1x8x128xf32>
    tpu.vector_store %arg4[%c0_7, %c0_8, %c0_9], %18 {strides = array<i32>} : memref<1x8x256xf32, #tpu.memory_space<vmem>>, vector<1x8x128xf32>,
    %c0_10 = arith.constant 0 : index
    %c0_11 = arith.constant 0 : index
    %c128_12 = arith.constant 128 : index
    %19 = vector.load %arg4[%c0_10, %c0_11, %c128_12] : memref<1x8x256xf32, #tpu.memory_space<vmem>>, vector<1x8x128xf32>
    %20 = vector.shape_cast %19 : vector<1x8x128xf32> to vector<8x128xf32>
    %21 = arith.addf %20, %12 : vector<8x128xf32>
    %c0_13 = arith.constant 0 : index
    %c0_14 = arith.constant 0 : index
    %c128_15 = arith.constant 128 : index
    %22 = vector.load %arg4[%c0_13, %c0_14, %c128_15] : memref<1x8x256xf32, #tpu.memory_space<vmem>>, vector<1x8x128xf32>
    %23 = vector.shape_cast %22 : vector<1x8x128xf32> to vector<8x128xf32>
    %24 = vector.shape_cast %21 : vector<8x128xf32> to vector<1x8x128xf32>
    tpu.vector_store %arg4[%c0_13, %c0_14, %c128_15], %24 {strides = array<i32>} : memref<1x8x256xf32, #tpu.memory_space<vmem>>, vector<1x8x128xf32>,
    return
  }
  func.func @transform_0(%arg0: i32, %arg1: i32, %arg2: i32) -> (i32, i32) {
    %c1_i32 = arith.constant 1 : i32
    %0 = arith.muli %arg0, %c1_i32 : i32
    %1 = arith.addi %0, %arg2 : i32
    %c0_i32 = arith.constant 0 : i32
    %2 = arith.minsi %1, %c0_i32 : i32
    %c0_i32_0 = arith.constant 0 : i32
    return %arg1, %2 : i32, i32
  }
  func.func @transform_1(%arg0: i32, %arg1: i32, %arg2: i32) -> (i32, i32, i32) {
    %c0_i32 = arith.constant 0 : i32
    %c0_i32_0 = arith.constant 0 : i32
    return %arg0, %arg1, %c0_i32 : i32, i32, i32
  }
}

</mosaic_0001>

<bundles_post_ra>
// kernel: tpu_custom_call.1
= control target key start
LH: loop header
LB: loop body
LE: loop exit
PB: predicated region body
PF: predicated region fallthrough
CT: control target
= control target key end

     0   :  { %6 = vsyncpa [#allocation3], 0  ;;  %s145_s0 = inlined_call_operand.hbm [shape: f32[8,256], index: 0, kind: input, shape index: {}]   ;;  %s146_s1 = inlined_call_operand.hbm [shape: f32[1,8,256], index: 1, kind: output, shape index: {}]  }
   0x1   :  { %7 = vsyncpa [#allocation4], 0  ;;  %s19_s8 = sshll.u32 %s145_s0, 4  ;;  %s127_s9 = smov [#allocation2]   ;;  %s20_s8 = int_to_ptr.hbm [resolvable:$true] %s19_s8 }
   0x2   :  { %s21_s10 = sshll.u32 %s127_s9, 4  ;;  %s22_s10 = int_to_ptr.vmem [resolvable:$true] %s21_s10 }
   0x3   :  { %24 = dma.hbm_to_vmem [thread:$0]  %s20_s8, 256, %s22_s10, [#allocation3]  }
   0x4   :  { %123 = dma.done.wait [#allocation3], 256  }
   0x5   :  { %124 = vsyncadd [#allocation3], 4294967040  ;;  %v39_v0 = vld [vmem:[#allocation2] sm:$0xff]  ;;  %v43_v1 = vld [vmem:[#allocation2 + $0x8] sm:$0xff]  ;;  %s128_s11 = smov [#allocation5]   ;;  %s60_s15 = sshll.u32 %s146_s1, 4  ;;  %s61_s15 = int_to_ptr.hbm [resolvable:$true] %s60_s15 }
   0x6   :  { %v44_v2 = vadd.f32 %v43_v1, %v39_v0  ;;  %v41_v3 = vmul.f32 %v39_v0, %v39_v0  ;;  %v45_v4 = vmul.f32 %v43_v1, %v43_v1  ;;  %s58_s12 = sshll.u32 %s128_s11, 4  ;;  %s59_s12 = int_to_ptr.vmem [resolvable:$true] %s58_s12 }
   0x8   :  { %v46_v5 = vadd.f32 %v45_v4, %v41_v3  ;;  %49 = vst [vmem:[#allocation5] sm:$0xff] %v44_v2 }
   0xa   :  { %52 = vst [vmem:[#allocation5 + $0x8] sm:$0xff] %v46_v5 }
   0xb   :  { %63 = dma.vmem_to_hbm [thread:$0]  %s59_s12, 256, %s61_s15, [#allocation4]  }
   0xc   :  { %125 = dma.done.wait [#allocation4], 256  }
   0xd   :  { %126 = vsyncadd [#allocation4], 4294967040 }
   0xe   :  { %68 = vsyncpa [#allocation3], 1 }
   0xf   :  { %69 = vsyncpa [#allocation4], 1 }

</bundles_post_ra>
